<compile_context>
chip_gen: v5e
topology: v5e:2x2
jax: 0.10.0
libtpu: 0.0.40
codegen_flags: <defaults>
</compile_context>

<pallas_src>
import functools

import jax
import jax.numpy as jnp
from jax.experimental import pallas as pl
from jax.experimental.pallas import tpu as pltpu

_COS_EPS = 1e-8      # torch F.cosine_similarity default eps
_NEG_BIG = -1e9      # bias for padded columns: exp((s - 1e9)/T) underflows to 0


def _round_up(x, m):
    return (x + m - 1) // m * m


def _infonce_kernel(q_ref, k_ref, b_ref, o_ref, *, inv_temp, tk, nk, nsub,
                    k_resident):
    """One (row-tile i, K-step kk) grid point.

    q_ref : (TQ, D)  bf16  normalized rows of the current row tile
    k_ref : (TK, D)  bf16  rotated K tile (streamed) OR (Mp, D) whole matrix
                           (VMEM-resident, sliced in-kernel)
    b_ref : (1, TK)  f32   per-column bias: -1 (valid) / -1e9 (padded); folds
                           the analytic row max (cos <= 1) and padding mask
    o_ref : (TQ, 1)  f32   running sum_j exp((cos_ij - 1)/T); self term is
                           removed at kk == 0 (diagonal block, rotated order).
    """
    kk = pl.program_id(1)

    @pl.when(kk == 0)
    def _init():
        o_ref[...] = jnp.zeros_like(o_ref)

    q = q_ref[...]                                   # (TQ, D) bf16
    tq = q.shape[0]
    sub = tk // nsub

    if k_resident:
        # Rotated K order: step kk handles block (i + kk) % nk.
        kk_rot = (pl.program_id(0) + kk) % nk

    acc = jnp.zeros((tq, 1), jnp.float32)
    p_chunks = []
    for j in range(nsub):                            # static, unrolled
        if k_resident:
            start = pl.multiple_of(kk_rot * tk + j * sub, sub)
            k_j = k_ref[pl.ds(start, sub), :]        # (sub, D) bf16
        else:
            k_j = k_ref[j * sub:(j + 1) * sub, :]    # (sub, D) bf16
        b_j = b_ref[:, j * sub:(j + 1) * sub]        # (1, sub) f32
        # MXU: cosine sub-tile (bf16 operands, f32 accumulation).
        s = jax.lax.dot_general(q, k_j, (((1,), (1,)), ((), ())),
                                preferred_element_type=jnp.float32)
        # exp((cos - 1)/T); padded columns (bias -1e9) underflow to 0.
        p = jnp.exp((s + b_j) * inv_temp)            # (TQ, sub) f32
        acc = acc + jnp.sum(p, axis=-1, keepdims=True)
        p_chunks.append(p)

    o_ref[...] += acc

    # The diagonal block is always K step 0 in the rotated order: remove the
    # self term exactly as the MXU produced it (runs once per row tile only).
    @pl.when(kk == 0)
    def _remove_diag():
        corr = jnp.zeros((tq, 1), jnp.float32)
        for j in range(nsub):
            p = p_chunks[j]
            row = jax.lax.broadcasted_iota(jnp.int32, p.shape, 0)
            col = j * sub + jax.lax.broadcasted_iota(jnp.int32, p.shape, 1)
            corr = corr + jnp.sum(jnp.where(row == col, p, 0.0),
                                  axis=-1, keepdims=True)
        o_ref[...] -= corr


def infonce_loss(features, temperature=0.07):
    """features: (batch, num_features, feat_dim) -> scalar InfoNCE loss (f32)."""
    batch, num_feat, feat_dim = features.shape
    m = batch * num_feat
    inv_temp = 1.0 / float(temperature)

    # One pass of normalization in f32 (hoisted out of the kernel).
    x = features.reshape(m, feat_dim).astype(jnp.float32)
    sq = jnp.sum(x * x, axis=-1)                                   # (M,)
    x_hat = x * jax.lax.rsqrt(jnp.maximum(sq, _COS_EPS))[:, None]  # unit rows
    # Exact diagonal logit, identical to torch's dot(x,x)/max(||x||^2,eps)/T
    # (exactly 1/T for every non-degenerate row).
    diag = (sq / jnp.maximum(sq, _COS_EPS)) * inv_temp             # (M,)

    # ---- tiling ---------------------------------------------------------
    if m <= 512:
        m_pad = _round_up(m, 8)
        tq = tk = m_pad                      # single tile
    else:
        tq = tk = 512                        # keeps grid[0] >= 2 for v7x cores
        m_pad = _round_up(m, 512)
    nk = m_pad // tk
    nsub = 2 if tk % 256 == 0 else 1
    # Keep the whole K operand VMEM-resident (DMA'd once) when it is small;
    # otherwise stream (tk, D) bf16 tiles (intensity ~= TQ flops/byte).
    k_resident = (nk > 1) and (m_pad * feat_dim * 2 <= 2 * 1024 * 1024)

    flat = x_hat
    if m_pad != m:
        flat = jnp.pad(flat, ((0, m_pad - m), (0, 0)))
    flat = flat.astype(jnp.bfloat16)         # bf16 MXU operands

    # Per-column bias: -1 folds the analytic max, -1e9 masks padded columns.
    bias = jnp.where(jnp.arange(m_pad) < m, -1.0, _NEG_BIG)
    bias = bias.astype(jnp.float32).reshape(1, m_pad)

    if k_resident:
        k_spec = pl.BlockSpec((m_pad, feat_dim), lambda i, k: (0, 0))
    else:
        k_spec = pl.BlockSpec((tk, feat_dim),
                              lambda i, k, nk=nk: ((i + k) % nk, 0))

    kernel = functools.partial(_infonce_kernel, inv_temp=inv_temp, tk=tk,
                               nk=nk, nsub=nsub, k_resident=k_resident)

    l_off = pl.pallas_call(
        kernel,
        out_shape=jax.ShapeDtypeStruct((m_pad, 1), jnp.float32),
        grid_spec=pltpu.PrefetchScalarGridSpec(
            num_scalar_prefetch=0,
            grid=(m_pad // tq, nk),
            in_specs=[pl.BlockSpec((tq, feat_dim), lambda i, k: (i, 0)),
                      k_spec,
                      pl.BlockSpec((1, tk),
                                   lambda i, k, nk=nk: (0, (i + k) % nk))],
            out_specs=pl.BlockSpec((tq, 1), lambda i, k: (i, 0))),
        compiler_params=pltpu.CompilerParams(
            dimension_semantics=("parallel", "arbitrary")),
    )(flat, flat, bias)[:m, 0]

    # loss_i = logsumexp_j(z_ij) - z_ii
    #        = (1/T - z_ii) + log(exp(z_ii - 1/T) + sum_{j!=i} exp(z_ij - 1/T))
    l_off = jnp.maximum(l_off, 0.0)          # guard f32 cancellation dust
    loss_rows = (inv_temp - diag) + jnp.log1p(jnp.expm1(diag - inv_temp) + l_off)
    return jnp.mean(loss_rows)


def _reference_loss(features, temperature):
    """Plain-JAX mirror of the torch module (full-precision matmul)."""
    b, n, d = features.shape
    x = features.reshape(b * n, d).astype(jnp.float32)
    nrm = jnp.sqrt(jnp.sum(x * x, axis=-1, keepdims=True))
    dots = jnp.matmul(x, x.T, precision=jax.lax.Precision.HIGHEST)
    sim = dots / jnp.maximum(nrm * nrm.T, _COS_EPS) / temperature
    lse = jax.scipy.special.logsumexp(sim, axis=-1)
    return jnp.mean(lse - jnp.diag(sim))


if __name__ == "__main__":
    loss_fn = jax.jit(infonce_loss, static_argnames=("temperature",))

    # 1) Small shape matching the module's forward (single-tile path).
    feats = jax.random.normal(jax.random.PRNGKey(0), (2, 4, 32),
                              dtype=jnp.float32)
    loss = jax.block_until_ready(loss_fn(feats, temperature=0.07))
    ref = _reference_loss(feats, 0.07)
    assert jnp.isfinite(loss), loss
    # bf16 off-diagonal logits at T=0.07; diagonal handled exactly in f32.
    assert jnp.allclose(loss, ref, rtol=5e-2, atol=1e-6), (loss, ref)

    # 2) Tiled + padded/masked + VMEM-resident-K path (M = 640 > 512).
    feats2 = jax.random.normal(jax.random.PRNGKey(1), (5, 128, 32),
                               dtype=jnp.float32)
    loss2 = jax.block_until_ready(loss_fn(feats2, temperature=1.0))
    ref2 = _reference_loss(feats2, 1.0)
    assert jnp.isfinite(loss2), loss2
    assert jnp.allclose(loss2, ref2, rtol=2e-3, atol=1e-6), (loss2, ref2)

    # 3) Streamed-K path (operand too big for residency), odd grid[0].
    feats3 = jax.random.normal(jax.random.PRNGKey(2), (3, 512, 768),
                               dtype=jnp.float32)
    loss3 = jax.block_until_ready(loss_fn(feats3, temperature=0.5))
    ref3 = _reference_loss(feats3, 0.5)
    assert jnp.isfinite(loss3), loss3
    assert jnp.allclose(loss3, ref3, rtol=2e-3, atol=1e-6), (loss3, ref3)

    print("KERNEL_OK")
</pallas_src>

<mosaic_0001>
module attributes {stable_mosaic.version = 11 : i64} {
  func.func @_infonce_kernel(%arg0: i32, %arg1: i32, %arg2: memref<8x32xbf16, #tpu.memory_space<vmem>>, %arg3: memref<8x32xbf16, #tpu.memory_space<vmem>>, %arg4: memref<1x8xf32, #tpu.memory_space<vmem>>, %arg5: memref<8x1xf32, #tpu.memory_space<vmem>>) attributes {dimension_semantics = [#tpu.dimension_semantics<parallel>, #tpu.dimension_semantics<arbitrary>], iteration_bounds = array<i64: 1, 1>, scalar_prefetch = 0 : i64, scratch_operands = 0 : i64, tpu.core_type = #tpu.core_type<tc>, window_params = [{transform_indices = @transform_0, window_bounds = array<i64: 8, 32>}, {transform_indices = @transform_1, window_bounds = array<i64: 8, 32>}, {transform_indices = @transform_2, window_bounds = array<i64: 1, 8>}, {transform_indices = @transform_3, window_bounds = array<i64: 8, 1>}]} {
    %c0_i32 = arith.constant 0 : i32
    %0 = arith.cmpi eq, %arg1, %c0_i32 : i32
    %1 = arith.extui %0 : i1 to i32
    %c0_i32_0 = arith.constant 0 : i32
    %2 = arith.cmpi ne, %1, %c0_i32_0 : i32
    scf.if %2 {
      %cst_15 = arith.constant 0.000000e+00 : f32
      %22 = vector.broadcast %cst_15 : f32 to vector<8x1xf32>
      %c0_16 = arith.constant 0 : index
      %c0_17 = arith.constant 0 : index
      %23 = vector.load %arg5[%c0_16, %c0_17] : memref<8x1xf32, #tpu.memory_space<vmem>>, vector<8x1xf32>
      tpu.vector_store %arg5[%c0_16, %c0_17], %22 {strides = array<i32>} : memref<8x1xf32, #tpu.memory_space<vmem>>, vector<8x1xf32>,
    } else {
    }
    %c0 = arith.constant 0 : index
    %c0_1 = arith.constant 0 : index
    %3 = vector.load %arg2[%c0, %c0_1] : memref<8x32xbf16, #tpu.memory_space<vmem>>, vector<8x32xbf16>
    %cst = arith.constant 0.000000e+00 : f32
    %4 = vector.broadcast %cst : f32 to vector<8x1xf32>
    %c0_2 = arith.constant 0 : index
    %c0_3 = arith.constant 0 : index
    %5 = vector.load %arg3[%c0_2, %c0_3] : memref<8x32xbf16, #tpu.memory_space<vmem>>, vector<8x32xbf16>
    %c0_4 = arith.constant 0 : index
    %c0_5 = arith.constant 0 : index
    %6 = vector.load %arg4[%c0_4, %c0_5] : memref<1x8xf32, #tpu.memory_space<vmem>>, vector<1x8xf32>
    %cst_6 = arith.constant dense<0.000000e+00> : vector<8x8xf32>
    %7 = tpu.matmul %3, %5, %cst_6 {dimension_numbers = #tpu.dot_dimension_numbers<[1], [1], [0], [0], [0, 0, 1, 0], [], []>} : vector<8x32xbf16>, vector<8x32xbf16>, vector<8x8xf32> -> vector<8x8xf32>
    %8 = vector.broadcast %6 : vector<1x8xf32> to vector<8x8xf32>
    %9 = arith.addf %7, %8 : vector<8x8xf32>
    %cst_7 = arith.constant 14.2857141 : f32
    %10 = vector.broadcast %cst_7 : f32 to vector<8x8xf32>
    %11 = arith.mulf %9, %10 : vector<8x8xf32>
    %12 = math.exp %11 : vector<8x8xf32>
    %cst_8 = arith.constant dense<0.000000e+00> : vector<8xf32>
    %13 = vector.multi_reduction <add>, %12, %cst_8 [1] : vector<8x8xf32> to vector<8xf32>
    %14 = vector.shape_cast %13 : vector<8xf32> to vector<8x1xf32>
    %15 = arith.addf %4, %14 : vector<8x1xf32>
    %c0_9 = arith.constant 0 : index
    %c0_10 = arith.constant 0 : index
    %16 = vector.load %arg5[%c0_9, %c0_10] : memref<8x1xf32, #tpu.memory_space<vmem>>, vector<8x1xf32>
    %17 = arith.addf %16, %15 : vector<8x1xf32>
    %c0_11 = arith.constant 0 : index
    %c0_12 = arith.constant 0 : index
    %18 = vector.load %arg5[%c0_11, %c0_12] : memref<8x1xf32, #tpu.memory_space<vmem>>, vector<8x1xf32>
    tpu.vector_store %arg5[%c0_11, %c0_12], %17 {strides = array<i32>} : memref<8x1xf32, #tpu.memory_space<vmem>>, vector<8x1xf32>,
    %c0_i32_13 = arith.constant 0 : i32
    %19 = arith.cmpi eq, %arg1, %c0_i32_13 : i32
    %20 = arith.extui %19 : i1 to i32
    %c0_i32_14 = arith.constant 0 : i32
    %21 = arith.cmpi ne, %20, %c0_i32_14 : i32
    scf.if %21 {
      %cst_15 = arith.constant 0.000000e+00 : f32
      %22 = vector.broadcast %cst_15 : f32 to vector<8x1xf32>
      %23 = tpu.iota {dimensions = array<i32: 0>} : vector<8x8xi32>
      %24 = tpu.iota {dimensions = array<i32: 1>} : vector<8x8xi32>
      %c0_i32_16 = arith.constant 0 : i32
      %25 = vector.broadcast %c0_i32_16 : i32 to vector<8x8xi32>
      %26 = arith.addi %25, %24 : vector<8x8xi32>
      %27 = arith.cmpi eq, %23, %26 : vector<8x8xi32>
      %cst_17 = arith.constant 0.000000e+00 : f32
      %28 = vector.broadcast %cst_17 : f32 to vector<8x8xf32>
      %29 = arith.select %27, %12, %28 : vector<8x8xi1>, vector<8x8xf32>
      %cst_18 = arith.constant dense<0.000000e+00> : vector<8xf32>
      %30 = vector.multi_reduction <add>, %29, %cst_18 [1] : vector<8x8xf32> to vector<8xf32>
      %31 = vector.shape_cast %30 : vector<8xf32> to vector<8x1xf32>
      %32 = arith.addf %22, %31 : vector<8x1xf32>
      %c0_19 = arith.constant 0 : index
      %c0_20 = arith.constant 0 : index
      %33 = vector.load %arg5[%c0_19, %c0_20] : memref<8x1xf32, #tpu.memory_space<vmem>>, vector<8x1xf32>
      %34 = arith.subf %33, %32 : vector<8x1xf32>
      %c0_21 = arith.constant 0 : index
      %c0_22 = arith.constant 0 : index
      %35 = vector.load %arg5[%c0_21, %c0_22] : memref<8x1xf32, #tpu.memory_space<vmem>>, vector<8x1xf32>
      tpu.vector_store %arg5[%c0_21, %c0_22], %34 {strides = array<i32>} : memref<8x1xf32, #tpu.memory_space<vmem>>, vector<8x1xf32>,
    } else {
    }
    return
  }
  func.func @transform_0(%arg0: i32, %arg1: i32) -> (i32, i32) {
    %c0_i32 = arith.constant 0 : i32
    %c0_i32_0 = arith.constant 0 : i32
    return %arg0, %c0_i32 : i32, i32
  }
  func.func @transform_1(%arg0: i32, %arg1: i32) -> (i32, i32) {
    %0 = arith.addi %arg0, %arg1 : i32
    %c1_i32 = arith.constant 1 : i32
    %c0_i32 = arith.constant 0 : i32
    %1 = arith.cmpi eq, %c1_i32, %c0_i32 : i32
    %c1_i32_0 = arith.constant 1 : i32
    %2 = arith.select %1, %c1_i32_0, %c1_i32 : i32
    %3 = arith.remsi %0, %2 : i32
    %c0_i32_1 = arith.constant 0 : i32
    %4 = arith.cmpi ne, %3, %c0_i32_1 : i32
    %c0_i32_2 = arith.constant 0 : i32
    %5 = arith.cmpi slt, %3, %c0_i32_2 : i32
    %c0_i32_3 = arith.constant 0 : i32
    %6 = arith.cmpi slt, %2, %c0_i32_3 : i32
    %7 = arith.xori %5, %6 : i1
    %8 = arith.andi %7, %4 : i1
    %9 = arith.addi %3, %2 : i32
    %10 = arith.select %8, %9, %3 : i32
    %c0_i32_4 = arith.constant 0 : i32
    %c0_i32_5 = arith.constant 0 : i32
    return %10, %c0_i32_4 : i32, i32
  }
  func.func @transform_2(%arg0: i32, %arg1: i32) -> (i32, i32) {
    %0 = arith.addi %arg0, %arg1 : i32
    %c1_i32 = arith.constant 1 : i32
    %c0_i32 = arith.constant 0 : i32
    %1 = arith.cmpi eq, %c1_i32, %c0_i32 : i32
    %c1_i32_0 = arith.constant 1 : i32
    %2 = arith.select %1, %c1_i32_0, %c1_i32 : i32
    %3 = arith.remsi %0, %2 : i32
    %c0_i32_1 = arith.constant 0 : i32
    %4 = arith.cmpi ne, %3, %c0_i32_1 : i32
    %c0_i32_2 = arith.constant 0 : i32
    %5 = arith.cmpi slt, %3, %c0_i32_2 : i32
    %c0_i32_3 = arith.constant 0 : i32
    %6 = arith.cmpi slt, %2, %c0_i32_3 : i32
    %7 = arith.xori %5, %6 : i1
    %8 = arith.andi %7, %4 : i1
    %9 = arith.addi %3, %2 : i32
    %10 = arith.select %8, %9, %3 : i32
    %c0_i32_4 = arith.constant 0 : i32
    %c0_i32_5 = arith.constant 0 : i32
    return %c0_i32_4, %10 : i32, i32
  }
  func.func @transform_3(%arg0: i32, %arg1: i32) -> (i32, i32) {
    %c0_i32 = arith.constant 0 : i32
    %c0_i32_0 = arith.constant 0 : i32
    return %arg0, %c0_i32 : i32, i32
  }
}

</mosaic_0001>

<bundles_post_ra>
// kernel: infonce_loss.1
= control target key start
LH: loop header
LB: loop body
LE: loop exit
PB: predicated region body
PF: predicated region fallthrough
CT: control target
= control target key end

     0   :  { %vm27_vm0 = vcmask 261120   ;;  %vm19_vm1 = vcmask 7168   ;;  %v84_v3 = vmov 0.0   ;;  %v62_v10 = vlaneseq  ;;  %s132_s1 = inlined_call_operand.vmem [shape: bf16[8,32], index: 1, kind: input, shape index: {}, may-alias: {0,1}]   ;;  %s133_s2 = inlined_call_operand.vmem [shape: f32[1,8], index: 2, kind: input, shape index: {}]   ;;  %s134_s0 = inlined_call_operand.vmem [shape: bf16[8,32], index: 0, kind: input, shape index: {}, may-alias: {0,1}]   ;;  %s135_s3 = inlined_call_operand.vmem [shape: f32[8,1], index: 3, kind: output, shape index: {}]  }
   0x1   :  { %v22_v0 = vld [vmem:[%s132_s1] sm:$0xf]  ;;  %20 = vst.msk [vmem:[%s135_s3] sm:$0xff] %vm19_vm1, %v84_v3  ;;  %vm50_vm2 = vcmask 64512  }
   0x2   :  { %v32_v1 = vsel %vm27_vm0, %v22_v0, 0  ;;  %v21_v2 = vld [vmem:[%s134_s0] sm:$0xf]  ;;  %v63_v11 = vshrl.u32 %v62_v10, 7  ;;  %v65_v12 = vand.u32 127, %v62_v10 }
   0x3   :  { %41 = vmatpush.bf16.xpose.msra.mxu0 %v32_v1  ;;  %v81_v4 = vld [vmem:[%s133_s2] ss:$0 sm:$0xff] }
   0x4   :  { %vm66_vm3 = vcmp.eq.s32.totalorder %v63_v11, %v65_v12 }
   0x8   :  { %v55_v17 = vld [vmem:[%s135_s3] sm:$0xff] }
   0xa   :  { %79 = vmatmul.msk.bf16.vlgmr.msra.gmra.mxu0 %vm27_vm0, %v21_v2 }
  0x87   :  { %v43_v5 = vpop.f32.mrf.mxu0 }
  0x88   :  { %v44_v6 = vadd.f32 %v81_v4, %v43_v5 }
  0x8a   :  { %v47_v7 = vmul.f32 14.285714, %v44_v6 }
  0x8c   :  { %v48_v8 = vmul.f32 1.442695, %v47_v7 }
  0x8e   :  { %82 = vpow2.f32 %v48_v8 }
  0x8f   :  { %v45_v9 = vpop.f32.mrf.mxu0 }
  0x94   :  { %v83_v13 = vpop.eup %82 }
  0x95   :  { %v51_v14 = vsel %vm50_vm2, %v83_v13, 0.0  ;;  %v67_v15 = vsel %vm66_vm3, %v83_v13, 0.0 }
  0x96   :  { %52 = vadd.xlane.f32.xlu0 %v51_v14  ;;  %v68_v16 = vsel %vm50_vm2, %v67_v15, 0.0 }
  0x9e   :  { %69 = vadd.xlane.f32.xlu0 %v68_v16 }
 0x109   :  { %v53_v18 = vpop.xlane.xlu0 %52 }
 0x10a   :  { %v56_v19 = vadd.f32 %v55_v17, %v53_v18 }
 0x10c   :  { %58 = vst.msk [vmem:[%s135_s3] sm:$0xff] %vm19_vm1, %v56_v19 }
 0x111   :  { %v70_v21 = vpop.xlane.xlu0 %69 }
 0x113   :  { %v72_v20 = vld [vmem:[%s135_s3] sm:$0xff] }
 0x114   :  { %v73_v22 = vsub.f32 %v72_v20, %v70_v21 }
 0x116   :  { %74 = vst.msk [vmem:[%s135_s3] sm:$0xff] %vm19_vm1, %v73_v22 }

</bundles_post_ra>
